<compile_context>
chip_gen: v6e
topology: v6e:2x2x1
jax: 0.10.0
libtpu: 0.0.40
codegen_flags: <defaults>
</compile_context>

<pallas_src>
import functools

import numpy as np

import jax
import jax.numpy as jnp
from jax.experimental import pallas as pl
from jax.experimental.pallas import tpu as pltpu


# ---------------------------------------------------------------------------
# Pallas kernel: lane-dense streaming mean over the last axis of an (R, S)
# view.  One output scalar per row.
# ---------------------------------------------------------------------------
def _make_pool_kernel(inv_s):
    def kernel(x_ref, o_ref, acc_ref):
        # x_ref:   (row_tile, s_tile) tile of the (R, S) view
        # o_ref:   (row_tile, 1) per-row mean, written on the last S step
        # acc_ref: (row_tile, 1) f32 accumulator, resident across the S axis
        k = pl.program_id(1)

        @pl.when(k == 0)
        def _():
            acc_ref[...] = jnp.zeros_like(acc_ref)

        # Upcast once per loaded tile (no-op for f32 inputs, needed for bf16
        # on v5e) and do a full-vreg lane reduction.
        acc_ref[...] += jnp.sum(
            x_ref[...].astype(jnp.float32), axis=1, keepdims=True)

        @pl.when(k == pl.num_programs(1) - 1)
        def _():
            o_ref[...] = (acc_ref[...] * inv_s).astype(o_ref.dtype)

    return kernel


def _pick_tile(total, granule, target):
    """Largest multiple of `granule` dividing `total` and <= target,
    else the full extent (full-extent blocks are always layout-legal)."""
    if total <= target or total % granule != 0:
        return total
    t = min(target, total)
    t -= t % granule
    while t >= granule:
        if total % t == 0:
            return t
        t -= granule
    return total


def window_mean_pool(x, *, frame_num, window_size):
    """x: (B, C, T, H, W).  Returns per-window channel means (B, nw, C)."""
    B, C, T, H, W = x.shape
    assert T == frame_num
    # TODO(synk): PyTorch's range(0, frame_num, window_size) allows a ragged
    # final window; here we require frame_num % window_size == 0.
    assert frame_num % window_size == 0
    num_windows = frame_num // window_size
    S = window_size * H * W
    R = B * C * num_windows

    # Zero-copy re-view: (B, C, T, H, W) row-major == (B, C, nw, ws, H, W)
    # row-major -> flatten to (R, S).  No HBM transpose before the kernel.
    x2d = x.reshape(R, S)

    # Tile sizes: lane-dense, bounded VMEM (<= ~2 MiB per input buffer so the
    # double-buffered pipeline fits comfortably on v5e/v6e and on v7x's
    # smaller 64 MiB VMEM).
    row_tile = _pick_tile(R, 8, 256)
    s_tile = _pick_tile(S, 128, 2048)
    grid = (R // row_tile, S // s_tile)

    kernel = _make_pool_kernel(1.0 / float(S))

    pooled = pl.pallas_call(
        kernel,
        out_shape=jax.ShapeDtypeStruct((R, 1), jnp.float32),
        grid_spec=pltpu.PrefetchScalarGridSpec(
            num_scalar_prefetch=0,
            grid=grid,
            in_specs=[pl.BlockSpec((row_tile, s_tile), lambda r, k: (r, k))],
            out_specs=pl.BlockSpec((row_tile, 1), lambda r, k: (r, 0)),
            scratch_shapes=[pltpu.VMEM((row_tile, 1), jnp.float32)],
        ),
        compiler_params=pltpu.CompilerParams(
            dimension_semantics=("parallel", "arbitrary"),
            vmem_limit_bytes=32 * 1024 * 1024,
        ),
        cost_estimate=pl.CostEstimate(
            flops=R * S,
            transcendentals=0,
            bytes_accessed=x2d.size * x2d.dtype.itemsize + R * 4,
        ),
    )(x2d)

    # (R, 1) -> (B, C, nw) -> (B, nw, C); tiny, plain-JAX glue.
    return jnp.transpose(pooled.reshape(B, C, num_windows), (0, 2, 1))


# ---------------------------------------------------------------------------
# Concrete modality extractor: pooled window means + C -> D projection.
# Projection is negligible flops, so it stays in plain JAX (per review).
# ---------------------------------------------------------------------------
def extractor_forward(x, weight, bias, *, frame_num, window_size):
    """x: (B, C, T, H, W) -> (B, num_windows, D)."""
    pooled = window_mean_pool(x, frame_num=frame_num, window_size=window_size)
    return pooled @ weight + bias  # (B, nw, C) @ (C, D) + (D,)


# ---------------------------------------------------------------------------
# PhysVerbModel.forward
# ---------------------------------------------------------------------------
def phys_verb_forward(input_data, params, *, frame_num, window_size):
    # --- extract_features ---------------------------------------------------
    modalities_features = {}
    for modality_names, modality_batch in input_data:
        modality_name = modality_names[0].split('_')[0]
        suffixes = np.array([n.split('_')[-1] for n in modality_names])
        not_empty = jnp.asarray(suffixes != 'EMPTY')
        p = params['extractors'][modality_name]
        feats = extractor_forward(
            modality_batch, p['weight'], p['bias'],
            frame_num=frame_num, window_size=window_size)
        # torch.zeros(...) + masked assignment of the non-EMPTY subset
        # == compute on the full batch and zero the EMPTY rows.
        feats = jnp.where(not_empty[:, None, None], feats,
                          jnp.zeros_like(feats))
        modalities_features[modality_name] = feats
    modalities_features = dict(sorted(modalities_features.items()))

    # --- fusion --------------------------------------------------------------
    # TODO(synk): modality_fusion_module is abstract in the spec; stand-in is
    # mean over temporal windows per modality, then mean across modalities.
    fused = jnp.mean(
        jnp.stack([f.mean(axis=1) for f in modalities_features.values()]),
        axis=0)  # (B, D)

    # --- classifiers ---------------------------------------------------------
    # TODO(synk): classifiers (per aggregation type) are abstract; stand-in is
    # a single linear head.
    logits = fused @ params['classifier']['weight'] + params['classifier']['bias']
    return {'clip': logits}


# ---------------------------------------------------------------------------
# Pure-JAX references
# ---------------------------------------------------------------------------
def _reference_extractor(x, weight, bias, *, frame_num, window_size):
    feats = []
    for i in range(0, frame_num, window_size):
        win = x[:, :, i:i + window_size, :, :]          # (B, C, ws, H, W)
        pooled = jnp.mean(win, axis=(2, 3, 4))          # (B, C)
        feats.append(pooled @ weight + bias)            # (B, D)
    return jnp.transpose(jnp.stack(feats), (1, 0, 2))   # (B, nw, D)


def _reference_forward(input_data, params, *, frame_num, window_size):
    modalities_features = {}
    for modality_names, modality_batch in input_data:
        modality_name = modality_names[0].split('_')[0]
        suffixes = np.array([n.split('_')[-1] for n in modality_names])
        not_empty = jnp.asarray(suffixes != 'EMPTY')
        p = params['extractors'][modality_name]
        feats = _reference_extractor(
            modality_batch, p['weight'], p['bias'],
            frame_num=frame_num, window_size=window_size)
        feats = jnp.where(not_empty[:, None, None], feats,
                          jnp.zeros_like(feats))
        modalities_features[modality_name] = feats
    modalities_features = dict(sorted(modalities_features.items()))
    fused = jnp.mean(
        jnp.stack([f.mean(axis=1) for f in modalities_features.values()]),
        axis=0)
    logits = fused @ params['classifier']['weight'] + params['classifier']['bias']
    return {'clip': logits}


if __name__ == "__main__":
    # Small shapes consistent with the module's forward.
    B, C, T, H, W = 2, 4, 16, 8, 8
    window_size = 4
    D = 32
    class_num = 10
    num_windows = T // window_size

    key = jax.random.PRNGKey(0)
    kx, kw, kb, kcw = jax.random.split(key, 4)
    x = jax.random.normal(kx, (B, C, T, H, W), dtype=jnp.float32)
    weight = jax.random.normal(kw, (C, D), dtype=jnp.float32) * 0.1
    bias = jax.random.normal(kb, (D,), dtype=jnp.float32) * 0.01
    cls_w = jax.random.normal(kcw, (D, class_num), dtype=jnp.float32) * 0.1
    cls_b = jnp.zeros((class_num,), dtype=jnp.float32)

    params = {
        'extractors': {'video': {'weight': weight, 'bias': bias}},
        'classifier': {'weight': cls_w, 'bias': cls_b},
    }
    # One EMPTY sample to exercise the masking path of extract_features.
    input_data = [(("video_a", "video_EMPTY"), x)]

    # Kernel-level check: extractor vs pure-JAX reference.
    feats = extractor_forward(x, weight, bias,
                              frame_num=T, window_size=window_size)
    feats = jax.block_until_ready(feats)
    ref_feats = _reference_extractor(x, weight, bias,
                                     frame_num=T, window_size=window_size)
    assert feats.shape == (B, num_windows, D), feats.shape
    assert jnp.allclose(feats, ref_feats, atol=1e-4, rtol=1e-4), \
        "extractor mismatch vs reference"

    # Full PhysVerbModel forward.
    out = phys_verb_forward(input_data, params,
                            frame_num=T, window_size=window_size)
    jax.block_until_ready(out['clip'])
    ref = _reference_forward(input_data, params,
                             frame_num=T, window_size=window_size)
    assert out['clip'].shape == (B, class_num), out['clip'].shape
    assert jnp.allclose(out['clip'], ref['clip'], atol=1e-4, rtol=1e-4), \
        "forward mismatch vs reference"

    print("KERNEL_OK")
</pallas_src>

<mosaic_0001>
module attributes {stable_mosaic.version = 11 : i64} {
  func.func @kernel(%arg0: i32, %arg1: i32, %arg2: memref<32x256xf32, #tpu.memory_space<vmem>>, %arg3: memref<32x1xf32, #tpu.memory_space<vmem>>, %arg4: memref<32x1xf32, #tpu.memory_space<vmem>>) attributes {dimension_semantics = [#tpu.dimension_semantics<parallel>, #tpu.dimension_semantics<arbitrary>], iteration_bounds = array<i64: 1, 1>, scalar_prefetch = 0 : i64, scratch_operands = 1 : i64, tpu.core_type = #tpu.core_type<tc>, window_params = [{transform_indices = @transform_0, window_bounds = array<i64: 32, 256>}, {transform_indices = @transform_1, window_bounds = array<i64: 32, 1>}]} {
    %c0_i32 = arith.constant 0 : i32
    %0 = arith.cmpi eq, %arg1, %c0_i32 : i32
    %1 = arith.extui %0 : i1 to i32
    %c0_i32_0 = arith.constant 0 : i32
    %2 = arith.cmpi ne, %1, %c0_i32_0 : i32
    scf.if %2 {
      %cst_8 = arith.constant 0.000000e+00 : f32
      %12 = vector.broadcast %cst_8 : f32 to vector<32x1xf32>
      %c0_9 = arith.constant 0 : index
      %c0_10 = arith.constant 0 : index
      %13 = vector.load %arg4[%c0_9, %c0_10] : memref<32x1xf32, #tpu.memory_space<vmem>>, vector<32x1xf32>
      tpu.vector_store %arg4[%c0_9, %c0_10], %12 {strides = array<i32>} : memref<32x1xf32, #tpu.memory_space<vmem>>, vector<32x1xf32>,
    } else {
    }
    %c0 = arith.constant 0 : index
    %c0_1 = arith.constant 0 : index
    %3 = vector.load %arg4[%c0, %c0_1] : memref<32x1xf32, #tpu.memory_space<vmem>>, vector<32x1xf32>
    %c0_2 = arith.constant 0 : index
    %c0_3 = arith.constant 0 : index
    %4 = vector.load %arg2[%c0_2, %c0_3] : memref<32x256xf32, #tpu.memory_space<vmem>>, vector<32x256xf32>
    %cst = arith.constant dense<0.000000e+00> : vector<32xf32>
    %5 = vector.multi_reduction <add>, %4, %cst [1] : vector<32x256xf32> to vector<32xf32>
    %6 = vector.shape_cast %5 : vector<32xf32> to vector<32x1xf32>
    %7 = arith.addf %3, %6 : vector<32x1xf32>
    %c0_4 = arith.constant 0 : index
    %c0_5 = arith.constant 0 : index
    %8 = vector.load %arg4[%c0_4, %c0_5] : memref<32x1xf32, #tpu.memory_space<vmem>>, vector<32x1xf32>
    tpu.vector_store %arg4[%c0_4, %c0_5], %7 {strides = array<i32>} : memref<32x1xf32, #tpu.memory_space<vmem>>, vector<32x1xf32>,
    %c0_i32_6 = arith.constant 0 : i32
    %9 = arith.cmpi eq, %arg1, %c0_i32_6 : i32
    %10 = arith.extui %9 : i1 to i32
    %c0_i32_7 = arith.constant 0 : i32
    %11 = arith.cmpi ne, %10, %c0_i32_7 : i32
    scf.if %11 {
      %c0_8 = arith.constant 0 : index
      %c0_9 = arith.constant 0 : index
      %12 = vector.load %arg4[%c0_8, %c0_9] : memref<32x1xf32, #tpu.memory_space<vmem>>, vector<32x1xf32>
      %cst_10 = arith.constant 3.906250e-03 : f32
      %13 = vector.broadcast %cst_10 : f32 to vector<32x1xf32>
      %14 = arith.mulf %12, %13 : vector<32x1xf32>
      %c0_11 = arith.constant 0 : index
      %c0_12 = arith.constant 0 : index
      %15 = vector.load %arg3[%c0_11, %c0_12] : memref<32x1xf32, #tpu.memory_space<vmem>>, vector<32x1xf32>
      tpu.vector_store %arg3[%c0_11, %c0_12], %14 {strides = array<i32>} : memref<32x1xf32, #tpu.memory_space<vmem>>, vector<32x1xf32>,
    } else {
    }
    return
  }
  func.func @transform_0(%arg0: i32, %arg1: i32) -> (i32, i32) {
    %c0_i32 = arith.constant 0 : i32
    return %arg0, %arg1 : i32, i32
  }
  func.func @transform_1(%arg0: i32, %arg1: i32) -> (i32, i32) {
    %c0_i32 = arith.constant 0 : i32
    %c0_i32_0 = arith.constant 0 : i32
    return %arg0, %c0_i32 : i32, i32
  }
}

</mosaic_0001>

<bundles_post_ra>
// kernel: tpu_custom_call.1
= control target key start
LH: loop header
LB: loop body
LE: loop exit
PB: predicated region body
PF: predicated region fallthrough
CT: control target
= control target key end

     0   :  { %6 = vsyncpa [#allocation4], 0  ;;  %s110_s6 = smov [#allocation3]   ;;  %s151_s0 = inlined_call_operand.hbm [shape: f32[32,256], index: 0, kind: input, shape index: {}]   ;;  %s152_s1 = inlined_call_operand.vmem [shape: f32[32,1], index: 1, kind: output, shape index: {}]  }
   0x1   :  { %s12_s7 = sshll.u32 %s110_s6, 4  ;;  %s13_s7 = int_to_ptr.vmem [resolvable:$true] %s12_s7 }
   0x2   :  { %s96_s8 = scalar_lea.vmem %s13_s7, 1024  ;;  %p101_p1 = scmp.lt.s32.totalorder %s13_s7, %s13_s7 }
   0x3   :  { %p97_p0 = scmp.ne.s32.totalorder %s13_s7, %s96_s8  ;;  %p102_p2 = scmp.lt.s32.totalorder %s96_s8, %s96_s8 }
   0x5   :  { %p103_p3 = por %p102_p2, %p101_p1 }
   0x7   :  { %p104_p4 = pnand %p103_p3, %p97_p0 }
   0x9   :  { %107 = shalt.err (!%p104_p4)
}
   0xa   :  { %s111_s9 = smov 256   ;;  %s112_s10 = smov 16  }
   0xb   :  { %18 = dma.hbm_to_vmem [thread:$0]  %s151_s0, 1024, %s13_s7, [#allocation4], %s111_s9, %s111_s9, %s112_s10  }
   0xc   :  { %108 = dma.done.wait [#allocation4], 1024  }
   0xd   :  { %109 = vsyncadd [#allocation4], 4294966272  ;;  %vm26_vm0 = vcmask 7168   ;;  %v113_v0 = vmov 0.0   ;;  %v39_v1 = vld [vmem:[#allocation3 + $0x20] sm:$0xff]  ;;  %v40_v2 = vld [vmem:[#allocation3 + $0x28] sm:$0xff] }
   0xe   :  { %29 = vst.msk [vmem:[#allocation2 + $0x10] sm:$0xff] %vm26_vm0, %v113_v0  ;;  %27 = vst.msk [vmem:[#allocation2] sm:$0xff] %vm26_vm0, %v113_v0  ;;  %v35_v3 = vld [vmem:[#allocation3] sm:$0xff]  ;;  %v49_v4 = vadd.f32 %v40_v2, %v39_v1  ;;  %v36_v5 = vld [vmem:[#allocation3 + $0x8] sm:$0xff] }
   0xf   :  { %28 = vst.msk [vmem:[#allocation2 + $0x8] sm:$0xff] %vm26_vm0, %v113_v0  ;;  %30 = vst.msk [vmem:[#allocation2 + $0x18] sm:$0xff] %vm26_vm0, %v113_v0  ;;  %v41_v6 = vld [vmem:[#allocation3 + $0x30] sm:$0xff]  ;;  %v42_v7 = vld [vmem:[#allocation3 + $0x38] sm:$0xff]  ;;  %v43_v8 = vadd.f32 %v36_v5, %v35_v3 }
  0x10   :  { %v37_v9 = vld [vmem:[#allocation3 + $0x10] sm:$0xff]  ;;  %v38_v10 = vld [vmem:[#allocation3 + $0x18] sm:$0xff]  ;;  %50 = vadd.xlane.f32.xlu1 %v49_v4  ;;  %v52_v11 = vadd.f32 %v42_v7, %v41_v6 }
  0x11   :  { %44 = vadd.xlane.f32.xlu0 %v43_v8  ;;  %v46_v12 = vadd.f32 %v38_v10, %v37_v9 }
  0x14   :  { %53 = vadd.xlane.f32.xlu1 %v52_v11 }
  0x15   :  { %47 = vadd.xlane.f32.xlu0 %v46_v12  ;;  %v33_v13 = vld [vmem:[#allocation2 + $0x10] sm:$0xff]  ;;  %v31_v14 = vld [vmem:[#allocation2] sm:$0xff] }
  0x16   :  { %v34_v19 = vld [vmem:[#allocation2 + $0x18] sm:$0xff]  ;;  %v32_v20 = vld [vmem:[#allocation2 + $0x8] sm:$0xff] }
  0x99   :  { %v51_v15 = vpop.xlane.xlu1 %50 }
  0x9a   :  { %v57_v16 = vadd.f32 %v51_v15, %v33_v13  ;;  %v45_v17 = vpop.xlane.xlu0 %44 }
  0x9b   :  { %v55_v18 = vadd.f32 %v45_v17, %v31_v14 }
  0x9c   :  { %62 = vst.msk [vmem:[#allocation2 + $0x10] sm:$0xff] %vm26_vm0, %v57_v16 }
  0x9d   :  { %60 = vst.msk [vmem:[#allocation2] sm:$0xff] %vm26_vm0, %v55_v18  ;;  %v54_v21 = vpop.xlane.xlu1 %53 }
  0x9e   :  { %v58_v22 = vadd.f32 %v54_v21, %v34_v19  ;;  %v48_v23 = vpop.xlane.xlu0 %47 }
  0x9f   :  { %v56_v24 = vadd.f32 %v48_v23, %v32_v20 }
  0xa0   :  { %63 = vst.msk [vmem:[#allocation2 + $0x18] sm:$0xff] %vm26_vm0, %v58_v22 }
  0xa1   :  { %61 = vst.msk [vmem:[#allocation2 + $0x8] sm:$0xff] %vm26_vm0, %v56_v24 }
  0xa3   :  { %v69_v25 = vld [vmem:[#allocation2 + $0x10] sm:$0xff] }
  0xa4   :  { %v73_v26 = vmul.f32 0.00390625, %v69_v25  ;;  %v67_v27 = vld [vmem:[#allocation2] sm:$0xff] }
  0xa5   :  { %v71_v28 = vmul.f32 0.00390625, %v67_v27 }
  0xa6   :  { %77 = vst.msk [vmem:[%s152_s1 + $0x10] sm:$0xff] %vm26_vm0, %v73_v26 }
  0xa7   :  { %75 = vst.msk [vmem:[%s152_s1] sm:$0xff] %vm26_vm0, %v71_v28  ;;  %v70_v29 = vld [vmem:[#allocation2 + $0x18] sm:$0xff] }
  0xa8   :  { %v74_v30 = vmul.f32 0.00390625, %v70_v29  ;;  %v68_v31 = vld [vmem:[#allocation2 + $0x8] sm:$0xff] }
  0xa9   :  { %v72_v32 = vmul.f32 0.00390625, %v68_v31 }
  0xaa   :  { %78 = vst.msk [vmem:[%s152_s1 + $0x18] sm:$0xff] %vm26_vm0, %v74_v30 }
  0xab   :  { %76 = vst.msk [vmem:[%s152_s1 + $0x8] sm:$0xff] %vm26_vm0, %v72_v32 }
  0xac   :  { %83 = vsyncpa [#allocation4], 1 }

</bundles_post_ra>
